<compile_context>
chip_gen: v7x
topology: tpu7x:2x2x1
jax: 0.10.0
libtpu: 0.0.40
codegen_flags: <defaults>
</compile_context>

<pallas_src>
import jax
import jax.numpy as jnp
from jax.experimental import pallas as pl
from jax.experimental.pallas import tpu as pltpu

N_POINTS = 10
IN_FEATURES = N_POINTS + 1   # 11
OUT_FEATURES = 1


def _round_up(n, m):
    return ((n + m - 1) // m) * m


def _net_kernel(x_ref, w_ref, b_ref, o_ref):
    # x_ref: (IN_FEATURES, TB) VMEM  -- feature-major, lane-dense over batch,
    #                                   any float dtype (cast in-kernel)
    # w_ref: (IN_FEATURES, 1)  VMEM  -- resident across all grid steps (f32)
    # b_ref: (1,)              SMEM  -- scalar bias (f32)
    # o_ref: (1, TB)           VMEM  -- lane-dense output slab (f32)
    x = x_ref[...].astype(jnp.float32)               # in-kernel cast rides free VPU slots
    w = w_ref[...]                                   # (11, 1), lane-broadcasts
    y = jnp.sum(x * w, axis=0, keepdims=True) + b_ref[0]   # VPU mul + XLU sublane reduce
    o_ref[...] = jax.nn.sigmoid(y)                   # EUP


def _net_pallas_feature_major(x_fm, w_col, b_arr, *, block_cols):
    """Core pallas_call. x_fm: (IN_FEATURES, B). Returns (1, B) float32."""
    in_f, B = x_fm.shape
    assert in_f == IN_FEATURES

    block_cols = max(128, _round_up(block_cols, 128))
    # Cap the tile so the parallel grid has at least 2 blocks (keeps both v7x
    # TensorCores fed); always a multiple of 128 lanes.
    tb = min(block_cols, max(128, _round_up(pl.cdiv(B, 2), 128)))
    num_blocks = pl.cdiv(B, tb)   # ragged tail handled by Pallas, no jnp.pad

    return pl.pallas_call(
        _net_kernel,
        out_shape=jax.ShapeDtypeStruct((OUT_FEATURES, B), jnp.float32),
        grid=(num_blocks,),
        in_specs=[
            pl.BlockSpec((IN_FEATURES, tb), lambda i: (0, i)),            # x tile
            pl.BlockSpec((IN_FEATURES, OUT_FEATURES), lambda i: (0, 0)),  # resident weights
            pl.BlockSpec(memory_space=pltpu.MemorySpace.SMEM),            # scalar bias
        ],
        out_specs=pl.BlockSpec((OUT_FEATURES, tb), lambda i: (0, i)),
        compiler_params=pltpu.CompilerParams(
            dimension_semantics=("parallel",),
            # ~24 MiB double-buffered footprint at tb=131072 (f32) -- above v5e's
            # 16 MiB default scoped limit, well under v7x's 64 MiB physical.
            vmem_limit_bytes=48 * 1024 * 1024,
        ),
        cost_estimate=pl.CostEstimate(
            flops=2 * B * IN_FEATURES,
            transcendentals=2 * B,                                        # sigmoid ~ exp + recip
            bytes_accessed=B * IN_FEATURES * x_fm.dtype.itemsize          # x read (actual dtype)
            + B * OUT_FEATURES * 4                                        # output write
            + (IN_FEATURES * OUT_FEATURES + OUT_FEATURES) * 4,            # params
        ),
    )(x_fm, w_col, b_arr)


def _prep_params(w, b):
    w_col = w.reshape(OUT_FEATURES, IN_FEATURES).T.astype(jnp.float32)    # (11, 1)
    b_arr = b.reshape(OUT_FEATURES).astype(jnp.float32)                   # (1,)
    return w_col, b_arr


def net_forward_feature_major(x_fm, w, b, *, block_cols=131072):
    """Fast path: x_fm is feature-major (IN_FEATURES, B). No layout plumbing.

    Returns (1, B) float32 = sigmoid(w @ x_fm + b), lane-dense over batch.
    """
    assert x_fm.shape[0] == IN_FEATURES
    B = x_fm.shape[1]
    w_col, b_arr = _prep_params(w, b)
    if B == 0:
        return jnp.zeros((OUT_FEATURES, 0), jnp.float32)
    return _net_pallas_feature_major(x_fm, w_col, b_arr, block_cols=block_cols)


def net_forward(x, w, b, *, block_cols=131072, min_pallas_batch=4096,
                force_pallas=False):
    """Module-compatible forward: x (B, IN_FEATURES) -> (B, 1) = sigmoid(x @ w.T + b).

    Small batches dispatch to fused XLA (a pallas_call's fixed launch overhead
    dominates there).  Large batch-major inputs pay one transpose pass; callers
    that already hold feature-major activations should use
    `net_forward_feature_major` and skip it.
    """
    B = x.shape[0]
    assert x.shape[1] == IN_FEATURES
    w_col, b_arr = _prep_params(w, b)

    if B == 0:
        return jnp.zeros((0, OUT_FEATURES), jnp.float32)

    if B < min_pallas_batch and not force_pallas:
        # Fused XLA path: single HBM pass, no kernel launch overhead.
        return jax.nn.sigmoid(x.astype(jnp.float32) @ w_col + b_arr)

    # Layout plumbing (one XLA pass over x): batch-major -> feature-major.
    # The dtype is preserved (cast happens in-kernel) so the DMA moves the
    # caller's narrow dtype if it is bf16.
    x_fm = x.T                                                             # (11, B)
    out = _net_pallas_feature_major(x_fm, w_col, b_arr, block_cols=block_cols)  # (1, B)
    return out.reshape(B, OUT_FEATURES)


def reference_forward(x, w, b):
    return jax.nn.sigmoid(x.astype(jnp.float32) @ w.T.astype(jnp.float32)
                          + b.reshape(1, -1).astype(jnp.float32))


if __name__ == "__main__":
    key = jax.random.PRNGKey(0)
    kx, kw, kb, kx2, kx3 = jax.random.split(key, 5)

    # Deterministic parameter init (mimics nn.Linear uniform(-1/sqrt(fan_in), +)).
    bound = 1.0 / (IN_FEATURES ** 0.5)
    w = jax.random.uniform(kw, (OUT_FEATURES, IN_FEATURES),
                           minval=-bound, maxval=bound, dtype=jnp.float32)
    b = jax.random.uniform(kb, (OUT_FEATURES,),
                           minval=-bound, maxval=bound, dtype=jnp.float32)

    # 1) Small, module-typical batch: exercises the fused-XLA dispatch path.
    B = 8
    x = jax.random.normal(kx, (B, IN_FEATURES), dtype=jnp.float32)
    out = jax.block_until_ready(net_forward(x, w, b))
    ref = reference_forward(x, w, b)
    assert out.shape == (B, OUT_FEATURES), out.shape
    assert jnp.allclose(out, ref, atol=1e-5, rtol=1e-5)

    # 2) Pallas path, batch-major wrapper, ragged multi-tile grid (cdiv tail).
    B2 = 300
    x2 = jax.random.normal(kx2, (B2, IN_FEATURES), dtype=jnp.float32)
    out2 = jax.block_until_ready(
        net_forward(x2, w, b, block_cols=128, force_pallas=True))
    ref2 = reference_forward(x2, w, b)
    assert out2.shape == (B2, OUT_FEATURES), out2.shape
    assert jnp.allclose(out2, ref2, atol=1e-5, rtol=1e-5)

    # 3) Pallas path, direct feature-major fast path (zero layout plumbing),
    #    plus the in-kernel bf16 -> f32 cast.
    B3 = 512
    x3 = jax.random.normal(kx3, (B3, IN_FEATURES), dtype=jnp.float32)
    out3 = jax.block_until_ready(
        net_forward_feature_major(x3.T, w, b, block_cols=256))   # (1, B3)
    ref3 = reference_forward(x3, w, b)
    assert out3.shape == (OUT_FEATURES, B3), out3.shape
    assert jnp.allclose(out3.reshape(B3, 1), ref3, atol=1e-5, rtol=1e-5)

    x3_bf16 = x3.astype(jnp.bfloat16)
    out3b = jax.block_until_ready(
        net_forward_feature_major(x3_bf16.T, w, b, block_cols=256))
    assert jnp.allclose(out3b.reshape(B3, 1), ref3, atol=3e-2, rtol=3e-2)

    print("KERNEL_OK")
</pallas_src>

<mosaic_0001>
module attributes {stable_mosaic.version = 11 : i64} {
  func.func @_net_kernel(%arg0: i32, %arg1: memref<11x128xf32, #tpu.memory_space<vmem>>, %arg2: memref<11x1xf32, #tpu.memory_space<vmem>>, %arg3: memref<1xf32, #tpu.memory_space<smem>>, %arg4: memref<1x128xf32, #tpu.memory_space<vmem>>) attributes {dimension_semantics = [#tpu.dimension_semantics<parallel>], iteration_bounds = array<i64: 3>, scalar_prefetch = 0 : i64, scratch_operands = 0 : i64, tpu.core_type = #tpu.core_type<tc>, window_params = [{transform_indices = @transform_0, window_bounds = array<i64: 11, 128>}, {pipeline_mode = #tpu.pipeline_mode<synchronous>, transform_indices = @transform_1, window_bounds = array<i64: 11, 1>}, {transform_indices = @transform_2, window_bounds = array<i64: 1>}, {transform_indices = @transform_3, window_bounds = array<i64: 1, 128>}]} {
    %c0 = arith.constant 0 : index
    %c0_0 = arith.constant 0 : index
    %0 = vector.load %arg1[%c0, %c0_0] : memref<11x128xf32, #tpu.memory_space<vmem>>, vector<11x128xf32>
    %c0_1 = arith.constant 0 : index
    %c0_2 = arith.constant 0 : index
    %1 = vector.load %arg2[%c0_1, %c0_2] : memref<11x1xf32, #tpu.memory_space<vmem>>, vector<11x1xf32>
    %2 = vector.broadcast %1 : vector<11x1xf32> to vector<11x128xf32>
    %3 = arith.mulf %0, %2 : vector<11x128xf32>
    %cst = arith.constant dense<0.000000e+00> : vector<128xf32>
    %4 = vector.multi_reduction <add>, %3, %cst [0] : vector<11x128xf32> to vector<128xf32>
    %5 = vector.shape_cast %4 : vector<128xf32> to vector<1x128xf32>
    %c0_3 = arith.constant 0 : index
    %6 = memref.load %arg3[%c0_3] : memref<1xf32, #tpu.memory_space<smem>>
    %7 = vector.broadcast %6 : f32 to vector<1x128xf32>
    %8 = arith.addf %5, %7 : vector<1x128xf32>
    %9 = arith.negf %8 : vector<1x128xf32>
    %10 = math.exp %9 : vector<1x128xf32>
    %cst_4 = arith.constant 1.000000e+00 : f32
    %11 = vector.broadcast %cst_4 : f32 to vector<1x128xf32>
    %12 = arith.addf %11, %10 : vector<1x128xf32>
    %13 = arith.divf %11, %12 : vector<1x128xf32>
    %c0_5 = arith.constant 0 : index
    %c0_6 = arith.constant 0 : index
    %14 = vector.load %arg4[%c0_5, %c0_6] : memref<1x128xf32, #tpu.memory_space<vmem>>, vector<1x128xf32>
    tpu.vector_store %arg4[%c0_5, %c0_6], %13 {strides = array<i32>} : memref<1x128xf32, #tpu.memory_space<vmem>>, vector<1x128xf32>,
    return
  }
  func.func @transform_0(%arg0: i32) -> (i32, i32) {
    %c0_i32 = arith.constant 0 : i32
    %c0_i32_0 = arith.constant 0 : i32
    return %c0_i32, %arg0 : i32, i32
  }
  func.func @transform_1(%arg0: i32) -> (i32, i32) {
    %c0_i32 = arith.constant 0 : i32
    %c0_i32_0 = arith.constant 0 : i32
    %c0_i32_1 = arith.constant 0 : i32
    return %c0_i32, %c0_i32_0 : i32, i32
  }
  func.func @transform_2(%arg0: i32) -> i32 {
    %c0_i32 = arith.constant 0 : i32
    %c0_i32_0 = arith.constant 0 : i32
    return %c0_i32 : i32
  }
  func.func @transform_3(%arg0: i32) -> (i32, i32) {
    %c0_i32 = arith.constant 0 : i32
    %c0_i32_0 = arith.constant 0 : i32
    return %c0_i32, %arg0 : i32, i32
  }
}

</mosaic_0001>

<bundles_post_ra>
// kernel: tpu_custom_call.1
= control target key start
LH: loop header
LB: loop body
LE: loop exit
PB: predicated region body
PF: predicated region fallthrough
CT: control target
= control target key end

     0   :  { %s662_s0 = inlined_call_operand.hbm [shape: f32[11,300], index: 0, kind: input, shape index: {}]   ;;  %s663_s1 = inlined_call_operand.vmem [shape: f32[11,1], index: 1, kind: input, shape index: {}]   ;;  %s664_s2 = inlined_call_operand.<no memory space> [shape: f32[1], index: 2, kind: input, shape index: {}]   ;;  %s665_s3 = inlined_call_operand.hbm [shape: f32[1,300], index: 3, kind: output, shape index: {}]  }
   0x1   :  { %8 = sst [smem:[#allocation2]] %s664_s2 }
   0x2   :  { %9 = vsyncpa [#allocation4], 0 }
   0x3   :  { %11 = vsyncpa [#allocation4 + $0x1], 0 }
   0x4   :  { %12 = vsyncpa [#allocation5], 0 }
   0x5   :  { %14 = vsyncpa [#allocation5 + $0x1], 0  ;;  %s495_s14 = smov 0   ;;  %s497_s15 = smov 0  }
   0x6   :  { %s499_s16 = smov 0   ;;  %s501_s17 = smov 0  }
   0x7 LB: > { %s516_s2 = sadd.s32 4294967295, %s464_s17   ;;  %s302_s18 = sadd.s32 4294967294, %s464_s17   ;;  %s464_s17 = sphi %s501_s17, %s678_s17   ;;  %s460_s16 = sphi %s499_s16, %s677_s16   ;;  %s456_s15 = sphi %s497_s15, %s676_s15   ;;  %s452_s14 = sphi %s495_s14, %s675_s14  }
   0x8   : > { %s520_s19 = sadd.s32 1, %s464_s17   ;;  %s27_s20 = sadd.s32 1, %s460_s16 }
   0x9   : > { %s24_s21 = ssub.s32 %s464_s17, %s520_s19  ;;  %p34_p0 = scmp.ne.s32.totalorder %s460_s16, %s456_s15 }
   0xa   : > { %p25_p1 = scmp.eq.s32.totalorder %s24_s21, 0  ;;  %p35_p2 = scmp.eq.s32.totalorder %s464_s17, 0 }
   0xb   : > { %p40_p3 = scmp.ne.s32.totalorder %s456_s15, %s452_s14  ;;  %p41_p4 = scmp.eq.s32.totalorder %s516_s2, 0 }
   0xc   : > { %s532_s22 = scalar_select %p25_p1, %s460_s16, %s27_s20  }
   0xd   : > { %p534_p5 = por %p35_p2, %p34_p0  ;;  %p538_p6 = por %p41_p4, %p40_p3 }
   0xe   : > { %p106_p7 = scmp.eq.s32.totalorder %s516_s2, 2  ;;  %p112_p8 = scmp.eq.s32.totalorder %s302_s18, 2 }
   0xf   : > { %p325_p9 = scmp.lt.s32.totalorder %s464_s17, 3  ;;  %s138_s27 = sand.u32 1, %s460_s16  }
  0x10   : > { %p544_p10 = por %p106_p7, %p34_p0  ;;  %p548_p11 = por %p112_p8, %p40_p3 }
  0x11   : > { %s306_s28 = sshll.u32 %s464_s17, 7  ;;  %s305_s29 = sshll.u32 %s138_s27, 4 }
  0x12   : > { %s669_s25 = scalar_select %p544_p10, 1, 0 }
  0x13   : > { %s670_s26 = scalar_select %p548_p11, 1, 0 }
  0x14   : > { %s557_s5 = scalar_lea.hbm %s662_s0, %s306_s28  ;;  %s142_s6 = scalar_lea.vmem [#allocation3], %s305_s29 }
  0x15   : > { %s148_s7 = sshll.u32 %s142_s6, 4  ;;  %p561_p12 = pnand %p325_p9, %p534_p5  ;;  %s565_s7 = int_to_ptr.vmem [resolvable:$true] %s148_s7 }
  0x16   : > { %s568_s9 = scalar_lea.sflag [#allocation4], %s138_s27  ;;  %s368_s10 = scalar_lea.hbm %s557_s5, 256 }
  0x17   : > { %p369_p0 = scmp.ne.s32.totalorder %s557_s5, %s368_s10  ;;  %p370_p1 = pneg %p561_p12 }
  0x18   : > { %s373_s13 = scalar_lea.hbm %s662_s0, 768  ;;  %p374_p4 = scmp.lt.u32.totalorder %s557_s5, %s662_s0 }
  0x19   : > { %p371_p2 = pnand %p370_p1, %p369_p0  ;;  %p375_p5 = scmp.lt.u32.totalorder %s373_s13, %s368_s10 }
  0x1a   : > { %p377_p8 = scmp.lt.u32.totalorder %s368_s10, %s557_s5 }
  0x1b   : > { %p372_p3 = pneg %p371_p2  ;;  %p376_p7 = por %p375_p5, %p374_p4 }
  0x1d   : > { %p378_p9 = por %p377_p8, %p376_p7 }
  0x1f   : > { %p379_p13 = pnand %p378_p9, %p372_p3 }
  0x21   : > { %382 = shalt.err (!%p379_p13)
}
  0x22   : > { %s383_s21 = scalar_lea.vmem %s565_s7, 256  ;;  %s466_s23 = smov [#allocation3]  }
  0x23   : > { %p384_p0 = scmp.ne.s32.totalorder %s565_s7, %s383_s21  ;;  %s388_s27 = sshll.u32 %s466_s23, 4  ;;  %s389_s27 = int_to_ptr.vmem [resolvable:$false] %s388_s27 }
  0x24   : > { %s390_s28 = scalar_lea.vmem %s389_s27, 512  ;;  %p391_p10 = scmp.lt.s32.totalorder %s565_s7, %s389_s27 }
  0x25   : > { %p386_p2 = pnand %p384_p0, %p370_p1  ;;  %p392_p4 = scmp.lt.s32.totalorder %s390_s28, %s383_s21 }
  0x27   : > { %p387_p11 = pneg %p386_p2  ;;  %p393_p5 = por %p392_p4, %p391_p10 }
  0x29   : > { %p394_p7 = pnand %p393_p5, %p387_p11 }
  0x2b   : > { %397 = shalt.err (!%p394_p7)
}
  0x2c   : > { %s467_s29 = smov 384   ;;  %s468_s30 = smov 128  }
  0x2d   : > { %s469_s4 = smov 8   ;;  %p156_p13 = scmp.lt.s32.totalorder %s464_s17, 4 }
  0x2e   : > { %320 = dma.hbm_to_vmem [thread:$0]  (!%p561_p12), %s557_s5, 256, %s565_s7, %s568_s9, %s467_s29, %s468_s30, %s469_s4  }
  0x2f   : > { %p672_p1 = scmp.ge.s32.totalorder %s464_s17, 1 }
  0x31   : > { %p157_p3 = pnand %p672_p1, %p156_p13 }
  0x32   : > { %s600_s6 = sand.u32 (!%p157_p3), 1, %s456_s15  }
  0x33   : > { %160 = sbr.rel (%p157_p3) target bundleno = 251 (0xfb), region = 32  ;;  %s308_s10 = sshll.u32 (!%p157_p3), %s600_s6, 4 }
  0x34   : > { %s163_s11 = scalar_lea.sflag (!%p157_p3), [#allocation4], %s600_s6  ;;  %s166_s12 = scalar_lea.vmem (!%p157_p3), [#allocation3], %s308_s10 }
  0x3a   : > { %443 = dma.done.wait (%p538_p6), %s163_s11, 256  }
  0x3b   : > { %445 = vsyncadd (%p538_p6), %s163_s11, 4294967040  ;;  %v470_v0 = vmov 0   ;;  %v191_v1 = vld [vmem:[%s663_s1 + $0x8] sm:$0x7]  ;;  %v190_v2 = vld [vmem:[%s663_s1] sm:$0xff]  ;;  %vm204_vm0 = vcmask 1042432  }
  0x3c   : > { %363 = vset.pattern.permute.xlu0 %v470_v0  ;;  %v189_v3 = vld [vmem:[%s166_s12 + $0x8] sm:$0x7]  ;;  %v188_v6 = vld [vmem:[%s166_s12] sm:$0xff]  ;;  %s213_s24 = sld [smem:[#allocation2]]  ;;  %s310_s13 = sshll.u32 %s516_s2, 4 }
  0x3d   : > { %199 = vperm.xlu0 %363, %v191_v1   ;;  %s187_s18 = scalar_lea.vmem [#allocation6], %s600_s6  ;;  %s619_s27 = scalar_lea.hbm %s665_s3, %s310_s13 }
  0x3e   : > { %s236_s20 = sshll.u32 %s187_s18, 4  ;;  %s224_s28 = scalar_lea.sflag [#allocation5], %s600_s6  ;;  %s621_s20 = int_to_ptr.vmem [resolvable:$true] %s236_s20 }
  0x3f   : > { %s398_s29 = scalar_lea.vmem %s621_s20, 16  ;;  %p673_p10 = scmp.ne.s32.totalorder %s669_s25, 0 }
  0x40   : > { %p399_p6 = scmp.ne.s32.totalorder %s621_s20, %s398_s29  ;;  %s471_s2 = smov [#allocation6]  }
  0x41   : > { %194 = vperm.xlu0 %363, %v190_v2   ;;  %s402_s30 = sshll.u32 %s471_s2, 4  ;;  %s403_s30 = int_to_ptr.vmem [resolvable:$false] %s402_s30 }
  0x42   : > { %v214_v16 = vstv %s213_s24  ;;  %p400_p11 = pnand %p399_p6, %p673_p10  ;;  %s404_s4 = scalar_lea.vmem %s403_s30, 32 }
  0x43   : > { %p405_p8 = scmp.lt.s32.totalorder %s621_s20, %s403_s30  ;;  %p406_p9 = scmp.lt.s32.totalorder %s404_s4, %s398_s29 }
  0x44   : > { %p401_p12 = pneg %p400_p11 }
  0x45   : > { %p407_p0 = por %p406_p9, %p405_p8 }
  0x47   : > { %p408_p2 = pnand %p407_p0, %p401_p12 }
  0xbc   : > { %v200_v4 = vpop.permute.xlu0 %199 }
  0xbd   : > { %v203_v5 = vmul.f32 %v200_v4, %v189_v3 }
  0xbf   : > { %v205_v9 = vsel %vm204_vm0, %v203_v5, 0.0 }
  0xc0   : > { %v195_v7 = vpop.permute.xlu0 %194 }
  0xc1   : > { %v202_v8 = vmul.f32 %v195_v7, %v188_v6 }
  0xc3   : > { %v206_v10 = vadd.f32 %v205_v9, %v202_v8 }
  0xc5   : > { %v207_v11 = vrot.slane %v206_v10, 4 }
  0xc7   : > { %v208_v12 = vadd.f32 %v207_v11, %v206_v10 }
  0xc9   : > { %v209_v13 = vrot.slane %v208_v12, 2 }
  0xcb   : > { %v210_v14 = vadd.f32 %v209_v13, %v208_v12 }
  0xcd   : > { %v211_v15 = vrot.slane %v210_v14, 1 }
  0xcf   : > { %v212_v17 = vadd.f32 %v211_v15, %v210_v14 }
  0xd1   : > { %v215_v18 = vadd.f32 %v214_v16, %v212_v17 }
  0xd3   : > { %v309_v19 = vmul.f32 -1.442695, %v215_v18 }
  0xd5   : > { %364 = vpow2.f32 %v309_v19 }
  0xdf   : > { %v365_v20 = vpop.eup %364 }
  0xe0   : > { %v219_v21 = vadd.f32 1.0, %v365_v20 }
  0xe2   : > { %366 = vrcp.f32 %v219_v21 }
  0xec   : > { %v367_v22 = vpop.eup %366 }
  0xed   : > { %222 = vst [vmem:[%s187_s18] sm:$0x1] %v367_v22 }
  0xee   : > { %411 = shalt.err (!%p408_p2)
}
  0xef   : > { %s412_s6 = scalar_lea.hbm %s619_s27, 16  ;;  %s416_s12 = scalar_lea.hbm %s665_s3, 48 }
  0xf0   : > { %p413_p4 = scmp.ne.s32.totalorder %s619_s27, %s412_s6  ;;  %p417_p13 = scmp.lt.u32.totalorder %s619_s27, %s665_s3 }
  0xf1   : > { %p418_p1 = scmp.lt.u32.totalorder %s416_s12, %s412_s6  ;;  %p420_p6 = scmp.lt.u32.totalorder %s412_s6, %s619_s27 }
  0xf2   : > { %p414_p5 = pnand %p413_p4, %p673_p10 }
  0xf3   : > { %p419_p3 = por %p418_p1, %p417_p13 }
  0xf4   : > { %p415_p7 = pneg %p414_p5 }
  0xf5   : > { %p421_p11 = por %p420_p6, %p419_p3 }
  0xf7   : > { %p422_p12 = pnand %p421_p11, %p415_p7 }
  0xf9   : > { %425 = shalt.err (!%p422_p12)
}
  0xfa   : > { %315 = dma.vmem_to_hbm [thread:$0]  (%p673_p10), %s621_s20, 16, %s619_s27, %s224_s28  }
  0xfb PF: > { %p326_p8 = scmp.ge.s32.totalorder %s464_s17, 2  ;;  %s248_s8 = sand.u32 1, %s452_s14  }
  0xfc   : > { %p674_p9 = scmp.ne.s32.totalorder %s670_s26, 0  ;;  %s249_s9 = scalar_lea.sflag [#allocation5], %s248_s8 }
  0xfe   : > { %p322_p0 = pnand %p326_p8, %p674_p9 }
 0x100   : > { %447 = dma.done.wait (!%p322_p0), %s249_s9, 16  }
 0x101   : > { %449 = vsyncadd (!%p322_p0), %s249_s9, 4294967280  ;;  %p17_p2 = scmp.ge.s32.totalorder %s520_s19, 5   ;;  %s675_s14 = smov %s456_s15 }
 0x102   : > { %s676_s15 = smov %s460_s16  ;;  %s677_s16 = smov %s532_s22 }
 0x103   : > { %s678_s17 = smov %s520_s19  ;;  %19 = sbr.rel (!%p17_p2) target bundleno = 7 (0x7), region = 77 }
 0x10a   :  { %253 = vsyncpa [#allocation4], 1 }
 0x10b   :  { %255 = vsyncpa [#allocation4 + $0x1], 1 }
 0x10c   :  { %256 = vsyncpa [#allocation5], 1 }
 0x10d   :  { %258 = vsyncpa [#allocation5 + $0x1], 1 }

</bundles_post_ra>
